<compile_context>
chip_gen: v5e
topology: v5e:2x2
jax: 0.10.0
libtpu: 0.0.40
codegen_flags: <defaults>
</compile_context>

<pallas_src>
import jax
import jax.numpy as jnp
from jax import lax
from jax.experimental import pallas as pl
from jax.experimental.pallas import tpu as pltpu
import numpy as np

_MIB = 1024 * 1024


# ------------------------- generic dense (Linear) path ------------------------

def _linear_resident_kernel(x_ref, w_ref, b_ref, o_ref):
    # x_ref: (tm, L)   w_ref: (L, L) torch (out,in) layout   b_ref: (1, L)
    y = lax.dot_general(
        x_ref[...], w_ref[...],
        dimension_numbers=(((1,), (1,)), ((), ())),   # x @ W^T, no transpose
        preferred_element_type=jnp.float32)
    o_ref[...] = (y + b_ref[...]).astype(o_ref.dtype)


def _linear_kernel_f32(x_ref, w_ref, b_ref, o_ref):
    # Tiled (M, N, K) matmul with f32 output: accumulate directly into o_ref
    # (no VMEM scratch, no epilogue copy).  Bias is written at k == 0.
    k = pl.program_id(2)

    @pl.when(k == 0)
    def _():
        o_ref[...] = jnp.broadcast_to(b_ref[...], o_ref.shape)

    o_ref[...] += lax.dot_general(
        x_ref[...], w_ref[...],
        dimension_numbers=(((1,), (1,)), ((), ())),
        preferred_element_type=jnp.float32)


def _linear_kernel_acc(x_ref, w_ref, b_ref, o_ref, acc_ref):
    # Scratch-accumulator variant, only used when the output dtype is not f32.
    k = pl.program_id(2)

    @pl.when(k == 0)
    def _():
        acc_ref[...] = jnp.zeros_like(acc_ref)

    acc_ref[...] += lax.dot_general(
        x_ref[...], w_ref[...],
        dimension_numbers=(((1,), (1,)), ((), ())),
        preferred_element_type=jnp.float32)

    @pl.when(k == pl.num_programs(2) - 1)
    def _():
        o_ref[...] = (acc_ref[...] + b_ref[...]).astype(o_ref.dtype)


def _pick_tile(dim, preferred, align):
    """Largest multiple of `align` that is <= `preferred` and divides `dim`;
    falls back to the full extent (always a legal block shape)."""
    t = (min(preferred, dim) // align) * align
    while t >= align:
        if dim % t == 0:
            return t
        t -= align
    return dim


def dense_denoiser_forward(x, weight, bias, *, tm=None, tn=None, tk=None):
    """y = x @ weight.T + bias  (torch.nn.Linear semantics).

    x:      (B, L) float32
    weight: (L, L) float32, torch (out_features, in_features) layout
    bias:   (L,)   float32
    """
    B, L = x.shape
    b2 = bias.reshape(1, L)          # metadata-only reshape, 2-D for TPU layout
    out_dtype = x.dtype
    itemsize = jnp.dtype(weight.dtype).itemsize
    force_tiled = (tn is not None) or (tk is not None)

    # ---- whole-W-VMEM-resident fast path ------------------------------------
    # W is one constant-index block: read from HBM exactly once, no K loop,
    # no per-K-step overhead or accumulator revisits.  The threshold keeps a
    # conservatively double-buffered W under 16 MiB so the full working set
    # stays well inside v7x's 64 MiB physical VMEM.
    if not force_tiled and 2 * L * L * itemsize <= 16 * _MIB:
        tm_r = tm if tm is not None else _pick_tile(B, 512, 8)
        return pl.pallas_call(
            _linear_resident_kernel,
            out_shape=jax.ShapeDtypeStruct((B, L), out_dtype),
            grid_spec=pltpu.PrefetchScalarGridSpec(
                num_scalar_prefetch=0,
                grid=(pl.cdiv(B, tm_r),),
                in_specs=[
                    pl.BlockSpec((tm_r, L), lambda i: (i, 0)),   # x rows
                    pl.BlockSpec((L, L), lambda i: (0, 0)),      # whole W
                    pl.BlockSpec((1, L), lambda i: (0, 0)),      # bias
                ],
                out_specs=pl.BlockSpec((tm_r, L), lambda i: (i, 0)),
            ),
            compiler_params=pltpu.CompilerParams(
                dimension_semantics=("parallel",),
                vmem_limit_bytes=48 * _MIB,
            ),
        )(x, weight, b2)

    # ---- general (M, N, K) tiled path ---------------------------------------
    # Large, double-buffered W tiles (preferred 512x1024 f32 ~= 2 MiB each) so
    # per-grid-step overhead is small vs. HBM time; tn < L keeps >= 2 blocks on
    # the 'parallel' j axis (both v7x TensorCores busy).  Working set at the
    # default tiles is ~10 MiB, inside the 48 MiB scoped budget everywhere.
    tm = tm if tm is not None else _pick_tile(B, 512, 8)
    tn = tn if tn is not None else _pick_tile(L, 512, 128)
    tk = tk if tk is not None else _pick_tile(L, 1024, 128)
    grid = (pl.cdiv(B, tm), pl.cdiv(L, tn), pl.cdiv(L, tk))

    f32_out = out_dtype == jnp.float32
    kernel = _linear_kernel_f32 if f32_out else _linear_kernel_acc
    scratch = [] if f32_out else [pltpu.VMEM((tm, tn), jnp.float32)]

    # TODO(synk): if profiling shows exposed DMA gaps at K-step boundaries, add
    #             pipeline_mode=pl.Buffered(3) to the W BlockSpec below.
    return pl.pallas_call(
        kernel,
        out_shape=jax.ShapeDtypeStruct((B, L), out_dtype),
        grid_spec=pltpu.PrefetchScalarGridSpec(
            num_scalar_prefetch=0,
            grid=grid,
            in_specs=[
                pl.BlockSpec((tm, tk), lambda i, j, k: (i, k)),    # x tile
                pl.BlockSpec((tn, tk), lambda i, j, k: (j, k)),    # W tile (out,in)
                pl.BlockSpec((1, tn), lambda i, j, k: (0, j)),     # bias tile
            ],
            out_specs=pl.BlockSpec((tm, tn), lambda i, j, k: (i, j)),
            scratch_shapes=scratch,
        ),
        compiler_params=pltpu.CompilerParams(
            dimension_semantics=("parallel", "parallel", "arbitrary"),
            vmem_limit_bytes=48 * _MIB,
        ),
    )(x, weight, b2)


# ----------------- 'ma' init fast path: 3-tap moving average ------------------

def _ma_kernel(x_ref, b_ref, o_ref):
    # x_ref: (tm, L) — the full series row is resident in this block, so roll
    # wraps at the true boundary and the idx masks below are exact.
    x = x_ref[...].astype(jnp.float32)
    L = x.shape[1]
    left = pltpu.roll(x, shift=1, axis=1)        # x_{i-1} at position i
    right = pltpu.roll(x, shift=L - 1, axis=1)   # x_{i+1}; L-1 == -1 mod L (shift must be >= 0)
    idx = lax.broadcasted_iota(jnp.int32, x.shape, 1)
    left = jnp.where(idx == 0, 0.0, left)        # first element: only 2 taps
    right = jnp.where(idx == L - 1, 0.0, right)  # last element:  only 2 taps
    o_ref[...] = ((x + left + right) * (1.0 / 3.0) + b_ref[...]).astype(o_ref.dtype)


def ma_denoiser_forward(x, bias):
    """Equivalent to dense_denoiser_forward with fresh 'ma' weights, but uses
    roll-based 3-tap VPU work with zero L x L weight HBM traffic.  Requires the
    full series row per block (see TODO on halo tiling for very large L)."""
    B, L = x.shape
    itemsize = jnp.dtype(x.dtype).itemsize
    # 2 double-buffered input row-blocks + 2 output row-blocks per grid step.
    budget = 24 * _MIB
    max_tm = max(8, (budget // (4 * L * itemsize)) // 8 * 8)
    tm = _pick_tile(B, min(512, max_tm), 8)
    b2 = bias.reshape(1, L)
    return pl.pallas_call(
        _ma_kernel,
        out_shape=jax.ShapeDtypeStruct((B, L), x.dtype),
        grid_spec=pltpu.PrefetchScalarGridSpec(
            num_scalar_prefetch=0,
            grid=(pl.cdiv(B, tm),),
            in_specs=[
                pl.BlockSpec((tm, L), lambda i: (i, 0)),
                pl.BlockSpec((1, L), lambda i: (0, 0)),
            ],
            out_specs=pl.BlockSpec((tm, L), lambda i: (i, 0)),
        ),
        compiler_params=pltpu.CompilerParams(
            dimension_semantics=("parallel",),
            vmem_limit_bytes=32 * _MIB,
        ),
    )(x, b2)


# ------------------------------ parameter init --------------------------------

def make_params(series_length: int, init_mode: str = "ma", key=None):
    """Deterministic parameter construction matching DenseNetDenoiser.__init__."""
    L = series_length
    if init_mode == "ma":
        w = np.eye(L, dtype=np.float32) / 3.0
        w[1:, :-1] += np.eye(L - 1, dtype=np.float32) / 3.0
        w[:-1, 1:] += np.eye(L - 1, dtype=np.float32) / 3.0
        weight = jnp.asarray(w)
        bias = jnp.zeros((L,), dtype=jnp.float32)
    else:  # 'random' — torch default: U(-1/sqrt(L), 1/sqrt(L)) for W and b
        if key is None:
            key = jax.random.PRNGKey(0)
        kw, kb = jax.random.split(key)
        bound = 1.0 / np.sqrt(L)
        weight = jax.random.uniform(kw, (L, L), jnp.float32, -bound, bound)
        bias = jax.random.uniform(kb, (L,), jnp.float32, -bound, bound)
    return weight, bias


if __name__ == "__main__":
    key = jax.random.PRNGKey(0)

    # --- module-sized small test: batch=2, series_length=8 (W-resident path) -
    B, L = 2, 8
    x = jax.random.normal(key, (B, L), dtype=jnp.float32)
    w_ma, b_ma = make_params(L, init_mode="ma")
    y = jax.block_until_ready(dense_denoiser_forward(x, w_ma, b_ma))
    np.testing.assert_allclose(np.asarray(y),
                               np.asarray(x) @ np.asarray(w_ma).T + np.asarray(b_ma),
                               rtol=1e-5, atol=1e-5)

    w_r, b_r = make_params(L, init_mode="random", key=key)
    y_r = jax.block_until_ready(dense_denoiser_forward(x, w_r, b_r))
    np.testing.assert_allclose(np.asarray(y_r),
                               np.asarray(x) @ np.asarray(w_r).T + np.asarray(b_r),
                               rtol=1e-5, atol=1e-5)

    # --- 'ma' roll-based fast path (lane-aligned L) matches the dense ref ----
    B1, L1 = 8, 128
    x1 = jax.random.normal(jax.random.PRNGKey(1), (B1, L1), dtype=jnp.float32)
    w1, b1 = make_params(L1, init_mode="ma")
    y_fast = jax.block_until_ready(ma_denoiser_forward(x1, b1))
    np.testing.assert_allclose(np.asarray(y_fast),
                               np.asarray(x1) @ np.asarray(w1).T + np.asarray(b1),
                               rtol=1e-5, atol=1e-5)

    # --- tiled (M, N, K) path with explicit small tiles: grid = (2, 2, 2),
    #     exercises K-accumulation directly into o_ref with bias at k == 0 ----
    B2, L2 = 16, 256
    k1, k2 = jax.random.split(key)
    x2 = jax.random.normal(k1, (B2, L2), dtype=jnp.float32)
    w_big, b_big = make_params(L2, init_mode="random", key=k2)
    y2 = jax.block_until_ready(
        dense_denoiser_forward(x2, w_big, b_big, tm=8, tn=128, tk=128))
    np.testing.assert_allclose(np.asarray(y2),
                               np.asarray(x2) @ np.asarray(w_big).T + np.asarray(b_big),
                               rtol=1e-4, atol=1e-5)

    print("KERNEL_OK")
</pallas_src>

<mosaic_0001>
module attributes {stable_mosaic.version = 11 : i64} {
  func.func @_linear_resident_kernel(%arg0: i32, %arg1: memref<2x8xf32, #tpu.memory_space<vmem>>, %arg2: memref<8x8xf32, #tpu.memory_space<vmem>>, %arg3: memref<1x8xf32, #tpu.memory_space<vmem>>, %arg4: memref<2x8xf32, #tpu.memory_space<vmem>>) attributes {dimension_semantics = [#tpu.dimension_semantics<parallel>], iteration_bounds = array<i64: 1>, scalar_prefetch = 0 : i64, scratch_operands = 0 : i64, tpu.core_type = #tpu.core_type<tc>, window_params = [{transform_indices = @transform_0, window_bounds = array<i64: 2, 8>}, {pipeline_mode = #tpu.pipeline_mode<synchronous>, transform_indices = @transform_1, window_bounds = array<i64: 8, 8>}, {pipeline_mode = #tpu.pipeline_mode<synchronous>, transform_indices = @transform_2, window_bounds = array<i64: 1, 8>}, {transform_indices = @transform_3, window_bounds = array<i64: 2, 8>}]} {
    %c0 = arith.constant 0 : index
    %c0_0 = arith.constant 0 : index
    %0 = vector.load %arg1[%c0, %c0_0] : memref<2x8xf32, #tpu.memory_space<vmem>>, vector<2x8xf32>
    %c0_1 = arith.constant 0 : index
    %c0_2 = arith.constant 0 : index
    %1 = vector.load %arg2[%c0_1, %c0_2] : memref<8x8xf32, #tpu.memory_space<vmem>>, vector<8x8xf32>
    %cst = arith.constant dense<0.000000e+00> : vector<2x8xf32>
    %2 = tpu.matmul %0, %1, %cst {dimension_numbers = #tpu.dot_dimension_numbers<[1], [1], [0], [0], [0, 0, 1, 0], [], []>} : vector<2x8xf32>, vector<8x8xf32>, vector<2x8xf32> -> vector<2x8xf32>
    %c0_3 = arith.constant 0 : index
    %c0_4 = arith.constant 0 : index
    %3 = vector.load %arg3[%c0_3, %c0_4] : memref<1x8xf32, #tpu.memory_space<vmem>>, vector<1x8xf32>
    %4 = vector.broadcast %3 : vector<1x8xf32> to vector<2x8xf32>
    %5 = arith.addf %2, %4 : vector<2x8xf32>
    %c0_5 = arith.constant 0 : index
    %c0_6 = arith.constant 0 : index
    %6 = vector.load %arg4[%c0_5, %c0_6] : memref<2x8xf32, #tpu.memory_space<vmem>>, vector<2x8xf32>
    tpu.vector_store %arg4[%c0_5, %c0_6], %5 {strides = array<i32>} : memref<2x8xf32, #tpu.memory_space<vmem>>, vector<2x8xf32>,
    return
  }
  func.func @transform_0(%arg0: i32) -> (i32, i32) {
    %c0_i32 = arith.constant 0 : i32
    %c0_i32_0 = arith.constant 0 : i32
    return %arg0, %c0_i32 : i32, i32
  }
  func.func @transform_1(%arg0: i32) -> (i32, i32) {
    %c0_i32 = arith.constant 0 : i32
    %c0_i32_0 = arith.constant 0 : i32
    %c0_i32_1 = arith.constant 0 : i32
    return %c0_i32, %c0_i32_0 : i32, i32
  }
  func.func @transform_2(%arg0: i32) -> (i32, i32) {
    %c0_i32 = arith.constant 0 : i32
    %c0_i32_0 = arith.constant 0 : i32
    %c0_i32_1 = arith.constant 0 : i32
    return %c0_i32, %c0_i32_0 : i32, i32
  }
  func.func @transform_3(%arg0: i32) -> (i32, i32) {
    %c0_i32 = arith.constant 0 : i32
    %c0_i32_0 = arith.constant 0 : i32
    return %arg0, %c0_i32 : i32, i32
  }
}

</mosaic_0001>

<bundles_post_ra>
// kernel: tpu_custom_call.1
= control target key start
LH: loop header
LB: loop body
LE: loop exit
PB: predicated region body
PF: predicated region fallthrough
CT: control target
= control target key end

     0   :  { %8 = vsyncpa [#allocation3], 0  ;;  %s215_s0 = inlined_call_operand.hbm [shape: f32[2,8], index: 0, kind: input, shape index: {}]   ;;  %s216_s1 = inlined_call_operand.hbm [shape: f32[8,8], index: 1, kind: input, shape index: {}]   ;;  %s217_s2 = inlined_call_operand.vmem [shape: f32[1,8], index: 2, kind: input, shape index: {}]   ;;  %s218_s3 = inlined_call_operand.hbm [shape: f32[2,8], index: 3, kind: output, shape index: {}]  }
   0x1   :  { %9 = vsyncpa [#allocation6], 0 }
   0x2   :  { %10 = vsyncpa [#allocation4], 0  ;;  %s16_s14 = sshll.u32 %s215_s0, 4  ;;  %s180_s15 = smov [#allocation2]   ;;  %s17_s14 = int_to_ptr.hbm [resolvable:$true] %s16_s14 }
   0x3   :  { %s18_s16 = sshll.u32 %s180_s15, 4  ;;  %s27_s19 = sshll.u32 %s216_s1, 4  ;;  %s19_s16 = int_to_ptr.vmem [resolvable:$true] %s18_s16  ;;  %s28_s19 = int_to_ptr.hbm [resolvable:$true] %s27_s19 }
   0x4   :  { %21 = dma.hbm_to_vmem [thread:$0]  %s17_s14, 32, %s19_s16, [#allocation3]  }
   0x5   :  { %s181_s20 = smov [#allocation5]  }
   0x6   :  { %s29_s21 = sshll.u32 %s181_s20, 4  ;;  %s30_s21 = int_to_ptr.vmem [resolvable:$true] %s29_s21 }
   0x7   :  { %32 = dma.hbm_to_vmem [thread:$0]  %s28_s19, 128, %s30_s21, [#allocation6]  }
   0x8   :  { %174 = dma.done.wait [#allocation3], 32  }
   0x9   :  { %175 = vsyncadd [#allocation3], 4294967264 }
   0xa   :  { %176 = dma.done.wait [#allocation6], 128  }
   0xb   :  { %177 = vsyncadd [#allocation6], 4294967168  ;;  %vm49_vm0 = vcmask 64512   ;;  %v44_v0 = vld [vmem:[#allocation5] sm:$0xff]  ;;  %v43_v1 = vld [vmem:[#allocation2] sm:$0x3] }
   0xc   :  { %96 = vmatpush.xpose.msk.msra.mxu0 %vm49_vm0, %v44_v0  ;;  %v101_v2 = vld [vmem:[%s217_s2] ss:$0 sm:$0xff]  ;;  %s182_s1 = smov [#allocation7]   ;;  %s85_s26 = sshll.u32 %s218_s3, 4  ;;  %vm76_vm1 = vcmask 58368   ;;  %s86_s26 = int_to_ptr.hbm [resolvable:$true] %s85_s26 }
   0xd   :  { %s83_s23 = sshll.u32 %s182_s1, 4  ;;  %s84_s23 = int_to_ptr.vmem [resolvable:$true] %s83_s23 }
   0xf   :  { %97 = vmatmul.msk.f32.vlgmr.msra.gmra.mxu0 %vm49_vm0, %v43_v1 }
  0x8c   :  { %v73_v3 = vpop.f32.mrf.mxu0 }
  0x8d   :  { %v74_v4 = vadd.f32 %v101_v2, %v73_v3 }
  0x8f   :  { %77 = vst.msk [vmem:[#allocation7] sm:$0x3] %vm76_vm1, %v74_v4 }
  0x90   :  { %88 = dma.vmem_to_hbm [thread:$0]  %s84_s23, 32, %s86_s26, [#allocation4]  }
  0x91   :  { %178 = dma.done.wait [#allocation4], 32  }
  0x92   :  { %179 = vsyncadd [#allocation4], 4294967264 }
  0x93   :  { %93 = vsyncpa [#allocation3], 1 }
  0x94   :  { %94 = vsyncpa [#allocation6], 1 }
  0x95   :  { %95 = vsyncpa [#allocation4], 1 }

</bundles_post_ra>
